<compile_context>
chip_gen: v7x
topology: tpu7x:2x2x1
jax: 0.10.0
libtpu: 0.0.40
codegen_flags: <defaults>
</compile_context>

<pallas_src>
import functools

import jax
import jax.numpy as jnp
from jax import lax
from jax.experimental import pallas as pl
from jax.experimental.pallas import tpu as pltpu

EPS = 1e-5
LANE = 128        # TPU lane width: keep feature dims lane-dense
MAX_TILE_K = 512  # Din tile cap (reduction axis)
MAX_TILE_N = 256  # Dout tile cap (output axis, matches 256-wide MXU on v6e/v7x)


def _dt_kernel(x_ref, g0_ref, b0_ref, w_ref, bias_ref, g1_ref, b1_ref,
               o_ref, acc_ref, *, inv_n):
    """One (j, k) grid step: j = Dout tile (parallel), k = Din tile (reduction)."""
    k = pl.program_id(1)

    @pl.when(k == 0)
    def _():
        acc_ref[...] = jnp.zeros_like(acc_ref)

    # ---- pre_norm: BatchNorm1d(in_dim), batch stats, one pass (sum / sumsq),
    #      affine folded into a single per-feature scale/shift ----
    x = x_ref[...].astype(jnp.float32)                        # [N, TILE_K]
    s0 = jnp.sum(x, axis=0, keepdims=True)                    # [1, TILE_K]
    ss0 = jnp.sum(x * x, axis=0, keepdims=True)
    mean0 = s0 * inv_n
    var0 = ss0 * inv_n - mean0 * mean0                        # biased variance
    a0 = lax.rsqrt(var0 + EPS) * g0_ref[...]                  # rstd * gamma
    c0 = b0_ref[...] - mean0 * a0                             # beta - mean*rstd*gamma
    xn = x * a0 + c0

    # ---- mlp1 partial matmul: bf16 MXU operands, f32 accumulation ----
    acc_ref[...] += jnp.dot(xn.astype(jnp.bfloat16), w_ref[...],
                            preferred_element_type=jnp.float32)

    # ---- epilogue at the last K tile: bias + ReLU + BatchNorm1d(out_dim) ----
    @pl.when(k == pl.num_programs(1) - 1)
    def _():
        h = jnp.maximum(acc_ref[...] + bias_ref[...], 0.0)    # [N, TILE_N]
        s1 = jnp.sum(h, axis=0, keepdims=True)
        ss1 = jnp.sum(h * h, axis=0, keepdims=True)
        mean1 = s1 * inv_n
        var1 = ss1 * inv_n - mean1 * mean1
        a1 = lax.rsqrt(var1 + EPS) * g1_ref[...]
        c1 = b1_ref[...] - mean1 * a1
        o_ref[...] = (h * a1 + c1).astype(o_ref.dtype)


def _pad_last(a, to, value=0.0):
    pad = to - a.shape[-1]
    if pad == 0:
        return a
    cfg = [(0, 0)] * (a.ndim - 1) + [(0, pad)]
    return jnp.pad(a, cfg, constant_values=value)


def _pick_tile(dim_p, cap):
    """Largest multiple of LANE that divides dim_p, capped at `cap`."""
    t = min(cap, dim_p)
    while dim_p % t:
        t -= LANE
    return t


def dt_forward(x, gamma0, beta0, w, bias, gamma1, beta1):
    """DT forward.  x: [N, Din] f32; w stored as [Din, Dout] (transposed vs
    nn.Linear.weight) so the kernel computes x @ W directly on the MXU."""
    n, din = x.shape
    dout = w.shape[1]
    din_p = pl.cdiv(din, LANE) * LANE
    dout_p = pl.cdiv(dout, LANE) * LANE
    tile_k = _pick_tile(din_p, MAX_TILE_K)
    tile_n = _pick_tile(dout_p, MAX_TILE_N)

    # Lane-dense zero padding: padded Din columns normalize to exactly 0 and
    # hit zero W rows; padded Dout columns come out as exactly 0 and are
    # sliced off below.
    x_p = _pad_last(x.astype(jnp.float32), din_p)
    g0_p = _pad_last(gamma0.astype(jnp.float32).reshape(1, din), din_p, 1.0)
    b0_p = _pad_last(beta0.astype(jnp.float32).reshape(1, din), din_p)
    w_p = jnp.pad(w, ((0, din_p - din), (0, dout_p - dout))).astype(jnp.bfloat16)
    bias_p = _pad_last(bias.astype(jnp.float32).reshape(1, dout), dout_p)
    g1_p = _pad_last(gamma1.astype(jnp.float32).reshape(1, dout), dout_p, 1.0)
    b1_p = _pad_last(beta1.astype(jnp.float32).reshape(1, dout), dout_p)

    grid = (dout_p // tile_n, din_p // tile_k)   # (j: parallel, k: reduction)

    cost = pl.CostEstimate(
        flops=2 * n * din_p * dout_p,
        transcendentals=grid[0] * din_p + dout_p,             # rsqrt rows
        bytes_accessed=(n * din_p * 4 * grid[0] + din_p * dout_p * 2
                        + n * dout_p * 4 + (2 * din_p + 3 * dout_p) * 4),
    )

    out_p = pl.pallas_call(
        functools.partial(_dt_kernel, inv_n=1.0 / n),
        out_shape=jax.ShapeDtypeStruct((n, dout_p), jnp.float32),
        grid=grid,
        in_specs=[
            pl.BlockSpec((n, tile_k), lambda j, k: (0, k)),        # x
            pl.BlockSpec((1, tile_k), lambda j, k: (0, k)),        # gamma0
            pl.BlockSpec((1, tile_k), lambda j, k: (0, k)),        # beta0
            pl.BlockSpec((tile_k, tile_n), lambda j, k: (k, j)),   # W (bf16)
            pl.BlockSpec((1, tile_n), lambda j, k: (0, j)),        # bias
            pl.BlockSpec((1, tile_n), lambda j, k: (0, j)),        # gamma1
            pl.BlockSpec((1, tile_n), lambda j, k: (0, j)),        # beta1
        ],
        out_specs=pl.BlockSpec((n, tile_n), lambda j, k: (0, j)),
        scratch_shapes=[pltpu.VMEM((n, tile_n), jnp.float32)],
        compiler_params=pltpu.CompilerParams(
            dimension_semantics=("parallel", "arbitrary"),
            vmem_limit_bytes=32 * 1024 * 1024,
        ),
        cost_estimate=cost,
    )(x_p, g0_p, b0_p, w_p, bias_p, g1_p, b1_p)

    return out_p[:, :dout]


def dt_reference(x, gamma0, beta0, w, bias, gamma1, beta1):
    """Pure-JAX reference for the PyTorch training-mode forward, mirroring the
    kernel's numerics (batch stats via sum/sumsq; bf16 MXU operands, f32 acc)."""
    def bn(v, g, b):
        m = jnp.mean(v, axis=0, keepdims=True)
        var = jnp.mean(v * v, axis=0, keepdims=True) - m * m
        return (v - m) / jnp.sqrt(var + EPS) * g + b

    h = bn(x.astype(jnp.float32), gamma0, beta0)
    h = jnp.dot(h.astype(jnp.bfloat16), w.astype(jnp.bfloat16),
                preferred_element_type=jnp.float32) + bias
    h = jnp.maximum(h, 0.0)
    return bn(h, gamma1, beta1)


if __name__ == "__main__":
    # Small shapes consistent with the module (feature-to-feature map).
    # Non-multiples of 128 exercise the padding path; grid ends up (3, 5).
    N, IN_DIM, OUT_DIM = 32, 600, 260

    key = jax.random.PRNGKey(0)
    kx, kw, kb, kg0, kb0, kg1, kb1 = jax.random.split(key, 7)

    x = jax.random.normal(kx, (N, IN_DIM), dtype=jnp.float32)

    # Deterministic synthetic parameters (no checkpoint load).
    w = jax.random.uniform(kw, (IN_DIM, OUT_DIM), dtype=jnp.float32,
                           minval=-0.1, maxval=0.1)
    bias = jax.random.uniform(kb, (1, OUT_DIM), dtype=jnp.float32,
                              minval=-0.1, maxval=0.1)
    gamma0 = 1.0 + 0.1 * jax.random.normal(kg0, (1, IN_DIM), dtype=jnp.float32)
    beta0 = 0.1 * jax.random.normal(kb0, (1, IN_DIM), dtype=jnp.float32)
    gamma1 = 1.0 + 0.1 * jax.random.normal(kg1, (1, OUT_DIM), dtype=jnp.float32)
    beta1 = 0.1 * jax.random.normal(kb1, (1, OUT_DIM), dtype=jnp.float32)

    out = dt_forward(x, gamma0, beta0, w, bias, gamma1, beta1)
    out = jax.block_until_ready(out)

    ref = dt_reference(x, gamma0, beta0, w, bias, gamma1, beta1)
    assert out.shape == (N, OUT_DIM)
    # bf16 MXU operands (f32 accumulation) -> compare against the matching-
    # precision reference; residual deltas are rounding/reassociation only.
    assert jnp.allclose(out, ref, atol=2e-2, rtol=2e-2), "mismatch vs reference"

    print("KERNEL_OK")
</pallas_src>

<mosaic_0001>
module attributes {stable_mosaic.version = 11 : i64} {
  func.func @_dt_kernel(%arg0: i32, %arg1: i32, %arg2: memref<32x128xf32, #tpu.memory_space<vmem>>, %arg3: memref<1x128xf32, #tpu.memory_space<vmem>>, %arg4: memref<1x128xf32, #tpu.memory_space<vmem>>, %arg5: memref<128x128xbf16, #tpu.memory_space<vmem>>, %arg6: memref<1x128xf32, #tpu.memory_space<vmem>>, %arg7: memref<1x128xf32, #tpu.memory_space<vmem>>, %arg8: memref<1x128xf32, #tpu.memory_space<vmem>>, %arg9: memref<32x128xf32, #tpu.memory_space<vmem>>, %arg10: memref<32x128xf32, #tpu.memory_space<vmem>>) attributes {dimension_semantics = [#tpu.dimension_semantics<parallel>, #tpu.dimension_semantics<arbitrary>], iteration_bounds = array<i64: 3, 5>, scalar_prefetch = 0 : i64, scratch_operands = 1 : i64, tpu.core_type = #tpu.core_type<tc>, window_params = [{transform_indices = @transform_0, window_bounds = array<i64: 32, 128>}, {transform_indices = @transform_1, window_bounds = array<i64: 1, 128>}, {transform_indices = @transform_2, window_bounds = array<i64: 1, 128>}, {transform_indices = @transform_3, window_bounds = array<i64: 128, 128>}, {transform_indices = @transform_4, window_bounds = array<i64: 1, 128>}, {transform_indices = @transform_5, window_bounds = array<i64: 1, 128>}, {transform_indices = @transform_6, window_bounds = array<i64: 1, 128>}, {transform_indices = @transform_7, window_bounds = array<i64: 32, 128>}]} {
    %c0_i32 = arith.constant 0 : i32
    %0 = arith.cmpi eq, %arg1, %c0_i32 : i32
    %1 = arith.extui %0 : i1 to i32
    %c0_i32_0 = arith.constant 0 : i32
    %2 = arith.cmpi ne, %1, %c0_i32_0 : i32
    scf.if %2 {
      %cst_18 = arith.constant 0.000000e+00 : f32
      %36 = vector.broadcast %cst_18 : f32 to vector<32x128xf32>
      %c0_19 = arith.constant 0 : index
      %c0_20 = arith.constant 0 : index
      %37 = vector.load %arg10[%c0_19, %c0_20] : memref<32x128xf32, #tpu.memory_space<vmem>>, vector<32x128xf32>
      tpu.vector_store %arg10[%c0_19, %c0_20], %36 {strides = array<i32>} : memref<32x128xf32, #tpu.memory_space<vmem>>, vector<32x128xf32>,
    } else {
    }
    %c0 = arith.constant 0 : index
    %c0_1 = arith.constant 0 : index
    %3 = vector.load %arg2[%c0, %c0_1] : memref<32x128xf32, #tpu.memory_space<vmem>>, vector<32x128xf32>
    %cst = arith.constant dense<0.000000e+00> : vector<128xf32>
    %4 = vector.multi_reduction <add>, %3, %cst [0] : vector<32x128xf32> to vector<128xf32>
    %5 = vector.shape_cast %4 : vector<128xf32> to vector<1x128xf32>
    %6 = arith.mulf %3, %3 : vector<32x128xf32>
    %cst_2 = arith.constant dense<0.000000e+00> : vector<128xf32>
    %7 = vector.multi_reduction <add>, %6, %cst_2 [0] : vector<32x128xf32> to vector<128xf32>
    %8 = vector.shape_cast %7 : vector<128xf32> to vector<1x128xf32>
    %cst_3 = arith.constant 3.125000e-02 : f32
    %9 = vector.broadcast %cst_3 : f32 to vector<1x128xf32>
    %10 = arith.mulf %5, %9 : vector<1x128xf32>
    %cst_4 = arith.constant 3.125000e-02 : f32
    %11 = vector.broadcast %cst_4 : f32 to vector<1x128xf32>
    %12 = arith.mulf %8, %11 : vector<1x128xf32>
    %13 = arith.mulf %10, %10 : vector<1x128xf32>
    %14 = arith.subf %12, %13 : vector<1x128xf32>
    %cst_5 = arith.constant 9.99999974E-6 : f32
    %15 = vector.broadcast %cst_5 : f32 to vector<1x128xf32>
    %16 = arith.addf %14, %15 : vector<1x128xf32>
    %17 = math.rsqrt %16 : vector<1x128xf32>
    %c0_6 = arith.constant 0 : index
    %c0_7 = arith.constant 0 : index
    %18 = vector.load %arg3[%c0_6, %c0_7] : memref<1x128xf32, #tpu.memory_space<vmem>>, vector<1x128xf32>
    %19 = arith.mulf %17, %18 : vector<1x128xf32>
    %c0_8 = arith.constant 0 : index
    %c0_9 = arith.constant 0 : index
    %20 = vector.load %arg4[%c0_8, %c0_9] : memref<1x128xf32, #tpu.memory_space<vmem>>, vector<1x128xf32>
    %21 = arith.mulf %10, %19 : vector<1x128xf32>
    %22 = arith.subf %20, %21 : vector<1x128xf32>
    %23 = vector.broadcast %19 : vector<1x128xf32> to vector<32x128xf32>
    %24 = arith.mulf %3, %23 : vector<32x128xf32>
    %25 = vector.broadcast %22 : vector<1x128xf32> to vector<32x128xf32>
    %26 = arith.addf %24, %25 : vector<32x128xf32>
    %c0_10 = arith.constant 0 : index
    %c0_11 = arith.constant 0 : index
    %27 = vector.load %arg10[%c0_10, %c0_11] : memref<32x128xf32, #tpu.memory_space<vmem>>, vector<32x128xf32>
    %28 = arith.truncf %26 : vector<32x128xf32> to vector<32x128xbf16>
    %c0_12 = arith.constant 0 : index
    %c0_13 = arith.constant 0 : index
    %29 = vector.load %arg5[%c0_12, %c0_13] : memref<128x128xbf16, #tpu.memory_space<vmem>>, vector<128x128xbf16>
    %cst_14 = arith.constant dense<0.000000e+00> : vector<32x128xf32>
    %30 = tpu.matmul %28, %29, %cst_14 {dimension_numbers = #tpu.dot_dimension_numbers<[1], [0], [0], [1], [0, 0, 1, 1], [], []>} : vector<32x128xbf16>, vector<128x128xbf16>, vector<32x128xf32> -> vector<32x128xf32>
    %31 = arith.addf %27, %30 : vector<32x128xf32>
    %c0_15 = arith.constant 0 : index
    %c0_16 = arith.constant 0 : index
    %32 = vector.load %arg10[%c0_15, %c0_16] : memref<32x128xf32, #tpu.memory_space<vmem>>, vector<32x128xf32>
    tpu.vector_store %arg10[%c0_15, %c0_16], %31 {strides = array<i32>} : memref<32x128xf32, #tpu.memory_space<vmem>>, vector<32x128xf32>,
    %c4_i32 = arith.constant 4 : i32
    %33 = arith.cmpi eq, %arg1, %c4_i32 : i32
    %34 = arith.extui %33 : i1 to i32
    %c0_i32_17 = arith.constant 0 : i32
    %35 = arith.cmpi ne, %34, %c0_i32_17 : i32
    scf.if %35 {
      %c0_18 = arith.constant 0 : index
      %c0_19 = arith.constant 0 : index
      %36 = vector.load %arg10[%c0_18, %c0_19] : memref<32x128xf32, #tpu.memory_space<vmem>>, vector<32x128xf32>
      %c0_20 = arith.constant 0 : index
      %c0_21 = arith.constant 0 : index
      %37 = vector.load %arg6[%c0_20, %c0_21] : memref<1x128xf32, #tpu.memory_space<vmem>>, vector<1x128xf32>
      %38 = vector.broadcast %37 : vector<1x128xf32> to vector<32x128xf32>
      %39 = arith.addf %36, %38 : vector<32x128xf32>
      %cst_22 = arith.constant 0.000000e+00 : f32
      %40 = vector.broadcast %cst_22 : f32 to vector<32x128xf32>
      %41 = arith.maximumf %39, %40 : vector<32x128xf32>
      %cst_23 = arith.constant dense<0.000000e+00> : vector<128xf32>
      %42 = vector.multi_reduction <add>, %41, %cst_23 [0] : vector<32x128xf32> to vector<128xf32>
      %43 = vector.shape_cast %42 : vector<128xf32> to vector<1x128xf32>
      %44 = arith.mulf %41, %41 : vector<32x128xf32>
      %cst_24 = arith.constant dense<0.000000e+00> : vector<128xf32>
      %45 = vector.multi_reduction <add>, %44, %cst_24 [0] : vector<32x128xf32> to vector<128xf32>
      %46 = vector.shape_cast %45 : vector<128xf32> to vector<1x128xf32>
      %cst_25 = arith.constant 3.125000e-02 : f32
      %47 = vector.broadcast %cst_25 : f32 to vector<1x128xf32>
      %48 = arith.mulf %43, %47 : vector<1x128xf32>
      %cst_26 = arith.constant 3.125000e-02 : f32
      %49 = vector.broadcast %cst_26 : f32 to vector<1x128xf32>
      %50 = arith.mulf %46, %49 : vector<1x128xf32>
      %51 = arith.mulf %48, %48 : vector<1x128xf32>
      %52 = arith.subf %50, %51 : vector<1x128xf32>
      %cst_27 = arith.constant 9.99999974E-6 : f32
      %53 = vector.broadcast %cst_27 : f32 to vector<1x128xf32>
      %54 = arith.addf %52, %53 : vector<1x128xf32>
      %55 = math.rsqrt %54 : vector<1x128xf32>
      %c0_28 = arith.constant 0 : index
      %c0_29 = arith.constant 0 : index
      %56 = vector.load %arg7[%c0_28, %c0_29] : memref<1x128xf32, #tpu.memory_space<vmem>>, vector<1x128xf32>
      %57 = arith.mulf %55, %56 : vector<1x128xf32>
      %c0_30 = arith.constant 0 : index
      %c0_31 = arith.constant 0 : index
      %58 = vector.load %arg8[%c0_30, %c0_31] : memref<1x128xf32, #tpu.memory_space<vmem>>, vector<1x128xf32>
      %59 = arith.mulf %48, %57 : vector<1x128xf32>
      %60 = arith.subf %58, %59 : vector<1x128xf32>
      %61 = vector.broadcast %57 : vector<1x128xf32> to vector<32x128xf32>
      %62 = arith.mulf %41, %61 : vector<32x128xf32>
      %63 = vector.broadcast %60 : vector<1x128xf32> to vector<32x128xf32>
      %64 = arith.addf %62, %63 : vector<32x128xf32>
      %c0_32 = arith.constant 0 : index
      %c0_33 = arith.constant 0 : index
      %65 = vector.load %arg9[%c0_32, %c0_33] : memref<32x128xf32, #tpu.memory_space<vmem>>, vector<32x128xf32>
      tpu.vector_store %arg9[%c0_32, %c0_33], %64 {strides = array<i32>} : memref<32x128xf32, #tpu.memory_space<vmem>>, vector<32x128xf32>,
    } else {
    }
    return
  }
  func.func @transform_0(%arg0: i32, %arg1: i32) -> (i32, i32) {
    %c0_i32 = arith.constant 0 : i32
    %c0_i32_0 = arith.constant 0 : i32
    return %c0_i32, %arg1 : i32, i32
  }
  func.func @transform_1(%arg0: i32, %arg1: i32) -> (i32, i32) {
    %c0_i32 = arith.constant 0 : i32
    %c0_i32_0 = arith.constant 0 : i32
    return %c0_i32, %arg1 : i32, i32
  }
  func.func @transform_2(%arg0: i32, %arg1: i32) -> (i32, i32) {
    %c0_i32 = arith.constant 0 : i32
    %c0_i32_0 = arith.constant 0 : i32
    return %c0_i32, %arg1 : i32, i32
  }
  func.func @transform_3(%arg0: i32, %arg1: i32) -> (i32, i32) {
    %c0_i32 = arith.constant 0 : i32
    return %arg1, %arg0 : i32, i32
  }
  func.func @transform_4(%arg0: i32, %arg1: i32) -> (i32, i32) {
    %c0_i32 = arith.constant 0 : i32
    %c0_i32_0 = arith.constant 0 : i32
    return %c0_i32, %arg0 : i32, i32
  }
  func.func @transform_5(%arg0: i32, %arg1: i32) -> (i32, i32) {
    %c0_i32 = arith.constant 0 : i32
    %c0_i32_0 = arith.constant 0 : i32
    return %c0_i32, %arg0 : i32, i32
  }
  func.func @transform_6(%arg0: i32, %arg1: i32) -> (i32, i32) {
    %c0_i32 = arith.constant 0 : i32
    %c0_i32_0 = arith.constant 0 : i32
    return %c0_i32, %arg0 : i32, i32
  }
  func.func @transform_7(%arg0: i32, %arg1: i32) -> (i32, i32) {
    %c0_i32 = arith.constant 0 : i32
    %c0_i32_0 = arith.constant 0 : i32
    return %c0_i32, %arg0 : i32, i32
  }
}

</mosaic_0001>

<bundles_post_ra>
// kernel: tpu_custom_call.1
= control target key start
LH: loop header
LB: loop body
LE: loop exit
PB: predicated region body
PF: predicated region fallthrough
CT: control target
= control target key end

     0   :  { %s1873_s0 = inlined_call_operand.hbm [shape: f32[32,640], index: 0, kind: input, shape index: {}]   ;;  %s1874_s1 = inlined_call_operand.hbm [shape: f32[1,640], index: 1, kind: input, shape index: {}]   ;;  %s1875_s2 = inlined_call_operand.vmem [shape: f32[1,640], index: 2, kind: input, shape index: {}]   ;;  %s1876_s3 = inlined_call_operand.hbm [shape: bf16[640,384], index: 3, kind: input, shape index: {}]   ;;  %s1877_s4 = inlined_call_operand.vmem [shape: f32[1,384], index: 4, kind: input, shape index: {}]   ;;  %s1878_s5 = inlined_call_operand.vmem [shape: f32[1,384], index: 5, kind: input, shape index: {}]   ;;  %s1879_s6 = inlined_call_operand.vmem [shape: f32[1,384], index: 6, kind: input, shape index: {}]   ;;  %s1880_s7 = inlined_call_operand.hbm [shape: f32[32,384], index: 7, kind: output, shape index: {}]  }
   0x1   :  { %1899 = sst [smem:[#allocation27_spill]] %s1873_s0 }
   0x2   :  { %1900 = sst [smem:[#allocation28_spill]] %s1874_s1 }
   0x3   :  { %1901 = sst [smem:[#allocation29_spill]] %s1875_s2 }
   0x4   :  { %1902 = sst [smem:[#allocation30_spill]] %s1877_s4 }
   0x5   :  { %1903 = sst [smem:[#allocation31_spill]] %s1878_s5 }
   0x6   :  { %1904 = sst [smem:[#allocation32_spill]] %s1879_s6 }
   0x7   :  { %1905 = sst [smem:[#allocation33_spill]] %s1880_s7 }
   0x8   :  { %12 = vsyncpa [#allocation4], 0 }
   0x9   :  { %14 = vsyncpa [#allocation4 + $0x1], 0 }
   0xa   :  { %15 = vsyncpa [#allocation7], 0 }
   0xb   :  { %17 = vsyncpa [#allocation7 + $0x1], 0 }
   0xc   :  { %18 = vsyncpa [#allocation5], 0 }
   0xd   :  { %20 = vsyncpa [#allocation5 + $0x1], 0  ;;  %s1403_s24 = smov 0   ;;  %s1405_s25 = smov 0  }
   0xe   :  { %s1407_s26 = smov 0   ;;  %s1409_s27 = smov 0  }
   0xf   :  { %s1411_s28 = smov 0   ;;  %s1413_s29 = smov 0  }
  0x10   :  { %s1415_s30 = smov 0   ;;  %s1417_s8 = smov 0  }
  0x11   :  { %s1419_s9 = smov 0   ;;  %s1421_s10 = smov 0  }
  0x12   :  { %s1423_s11 = smov 0   ;;  %s1425_s12 = smov 0  }
  0x13   :  { %s1427_s13 = smov 0   ;;  %s1429_s14 = smov 0  }
  0x14 LB: > { %1906 = sst [smem:[#allocation14_spill]] %s1295_s24  ;;  %s1472_s15 = sadd.s32 4294967295, %s1347_s14   ;;  %s1347_s14 = sphi %s1429_s14, %s26_s14   ;;  %s1343_s13 = sphi %s1427_s13, %s1975_s13   ;;  %s1339_s12 = sphi %s1425_s12, %s1974_s12   ;;  %s1335_s11 = sphi %s1423_s11, %s1973_s11   ;;  %s1331_s10 = sphi %s1421_s10, %s1972_s10   ;;  %s1327_s9 = sphi %s1419_s9, %s1962_s9   ;;  %s1323_s8 = sphi %s1417_s8, %s1971_s8   ;;  %s1319_s30 = sphi %s1415_s30, %s1970_s30   ;;  %s1315_s29 = sphi %s1413_s29, %s1969_s29   ;;  %s1311_s28 = sphi %s1411_s28, %s1968_s28   ;;  %s1307_s27 = sphi %s1409_s27, %s1967_s27   ;;  %s1303_s26 = sphi %s1407_s26, %s1959_s26   ;;  %s1299_s25 = sphi %s1405_s25, %s1966_s25   ;;  %s1295_s24 = sphi %s1403_s24, %s1965_s24  }
  0x15   : > { %1907 = sst [smem:[#allocation15_spill]] %s1303_s26  ;;  %s35_s17 = sadd.s32 1, %s1339_s12 }
  0x16   : > { %1908 = sst [smem:[#allocation16_spill]] %s1327_s9  ;;  %s38_s18 = sadd.s32 1, %s1343_s13 }
  0x17   : > { %1909 = sst [smem:[#allocation17_spill]] %s1331_s10  ;;  %p36_p0 = scmp.ge.s32.totalorder %s35_s17, 5 }
  0x18   : > { %1910 = sst [smem:[#allocation18_spill]] %s1335_s11  ;;  %s45_s19 = sadd.s32 1, %s1327_s9 }
  0x19   : > { %1911 = sst [smem:[#allocation19_spill]] %s1347_s14  ;;  %p52_p1 = scmp.ne.s32.totalorder %s1327_s9, %s1323_s8 }
  0x1a   : > { %p53_p2 = scmp.eq.s32.totalorder %s1347_s14, 0  ;;  %s1977_s17 = smov (%p36_p0, %s35_s17), 0 }
  0x1b   : > { %1912 = sst [smem:[#allocation20_spill]] %s1977_s17  ;;  %s1979_s18 = smov (!%p36_p0, %s38_s18), %s1343_s13 }
  0x1c   : > { %s42_s20 = ssub.s32 %s1339_s12, %s1977_s17  ;;  %p1488_p3 = por %p53_p2, %p52_p1 }
  0x1d   : > { %p40_p4 = scmp.ge.s32.totalorder %s1979_s18, 3  ;;  %p43_p5 = scmp.eq.s32.totalorder %s42_s20, 0 }
  0x1e   : > { %p58_p6 = scmp.ne.s32.totalorder %s1323_s8, %s1319_s30  ;;  %p59_p7 = scmp.eq.s32.totalorder %s1472_s15, 0 }
  0x1f   : > { %s1981_s18 = smov (%p40_p4, %s1979_s18), 0  ;;  %s125_s17 = sadd.s32 1, %s1315_s29 }
  0x20   : > { %1914 = sst [smem:[#allocation21_spill]] %s1981_s18  ;;  %p1501_p8 = por %p59_p7, %p58_p6 }
  0x21   : > { %s1497_s22 = scalar_select %p43_p5, %s1327_s9, %s45_s19  }
  0x22   : > { %s1916_s23 = scalar_select %p1501_p8, 1, 0 }
  0x23   : > { %1915 = sst [smem:[#allocation22_spill]] %s1497_s22  ;;  %s121_s16 = ssub.s32 %s1343_s13, %s1981_s18 }
  0x24   : > { %s122_s30 = sor.u32 %s121_s16, %s42_s20  ;;  %p132_p10 = scmp.ne.s32.totalorder %s1315_s29, %s1311_s28 }
  0x25   : > { %p123_p9 = scmp.eq.s32.totalorder %s122_s30, 0  ;;  %p138_p11 = scmp.ne.s32.totalorder %s1311_s28, %s1307_s27 }
  0x26   : > { %p227_p12 = scmp.eq.s32.totalorder %s121_s16, 0  ;;  %p1517_p13 = por %p132_p10, %p53_p2 }
  0x27   : > { %s1513_s19 = scalar_select %p123_p9, %s1315_s29, %s125_s17  }
  0x28   : > { %p1523_p0 = por %p138_p11, %p59_p7  ;;  %s229_s30 = sadd.s32 1, %s1303_s26 }
  0x29   : > { %1917 = sst [smem:[#allocation23_spill]] %s1513_s19  ;;  %p239_p1 = scmp.ne.s32.totalorder %s1303_s26, %s1299_s25 }
  0x2a   : > { %s1919_s20 = scalar_select %p1523_p0, 1, 0 }
  0x2b   : > { %s1531_s27 = scalar_select %p227_p12, %s1303_s26, %s229_s30  }
  0x2c   : > { %p240_p4 = scmp.eq.s32.totalorder %s1472_s15, 14  ;;  %p245_p5 = scmp.ne.s32.totalorder %s1299_s25, %s1295_s24 }
  0x2d   : > { %1920 = sst [smem:[#allocation24_spill]] %s1531_s27  ;;  %s1921_s16 = sadd.s32 4294967294, %s1347_s14  }
  0x2e   : > { %p246_p6 = scmp.eq.s32.totalorder %s1921_s16, 14  ;;  %p1538_p9 = por %p240_p4, %p239_p1 }
  0x2f   : > { %p1890_p2 = scmp.lt.s32.totalorder %s1347_s14, 15  ;;  %s1548_s19 = sand.u32 1, %s1327_s9  }
  0x30   : > { %s1922_s17 = scalar_select %p1538_p9, 1, 0 }
  0x31   : > { %p1543_p10 = por %p246_p6, %p245_p5  ;;  %s888_s7 = sshll.u32 %s1548_s19, 5 }
  0x32   : > { %1923 = sst [smem:[#allocation25_spill]] %s1922_s17  ;;  %p1555_p7 = pnand %p1890_p2, %p1488_p3 }
  0x33   : > { %s1924_s18 = scalar_select %p1543_p10, 1, 0 }
  0x34   : > { %s270_s16 = scalar_lea.vmem [#allocation3], %s888_s7  ;;  %s286_s26 = sand.u32 1, %s1347_s14  }
  0x35   : > { %1925 = sst [smem:[#allocation26_spill]] %s1924_s18  ;;  %s276_s27 = sshll.u32 %s270_s16, 4  ;;  %s1560_s27 = int_to_ptr.vmem [resolvable:$true] %s276_s27 }
  0x36   : > { %s890_s24 = sshll.u32 %s1339_s12, 4  ;;  %s289_s18 = scalar_lea.vmem [#allocation6], %s1548_s19 }
  0x37   : > { %s296_s9 = sshll.u32 %s289_s18, 4  ;;  %s1927_s1 = sld [smem:[#allocation28_spill]]  ;;  %s1569_s9 = int_to_ptr.vmem [resolvable:$true] %s296_s9 }
  0x38   : > { %s1571_s21 = scalar_lea.sflag [#allocation7], %s286_s26  ;;  %p1105_p11 = pneg %p1555_p7 }
  0x3d   : > { %s1567_s5 = scalar_lea.hbm %s1927_s1, %s890_s24  ;;  %s1108_s24 = scalar_lea.hbm %s1927_s1, 80 }
  0x3e   : > { %s1103_s7 = scalar_lea.hbm %s1567_s5, 16  ;;  %p1109_p4 = scmp.lt.u32.totalorder %s1567_s5, %s1927_s1 }
  0x3f   : > { %p1104_p3 = scmp.ne.s32.totalorder %s1567_s5, %s1103_s7  ;;  %p1110_p5 = scmp.lt.u32.totalorder %s1108_s24, %s1103_s7 }
  0x40   : > { %p1112_p2 = scmp.lt.u32.totalorder %s1103_s7, %s1567_s5 }
  0x41   : > { %p1106_p12 = pnand %p1105_p11, %p1104_p3  ;;  %p1111_p6 = por %p1110_p5, %p1109_p4 }
  0x43   : > { %p1107_p1 = pneg %p1106_p12  ;;  %p1113_p10 = por %p1112_p2, %p1111_p6 }
  0x45   : > { %p1114_p9 = pnand %p1113_p10, %p1107_p1 }
  0x47   : > { %1117 = shalt.err (!%p1114_p9)
}
  0x48   : > { %s1118_s26 = scalar_lea.vmem %s1569_s9, 16  ;;  %s1349_s18 = smov [#allocation6]  }
  0x49   : > { %p1119_p3 = scmp.ne.s32.totalorder %s1569_s9, %s1118_s26  ;;  %s1123_s6 = sshll.u32 %s1349_s18, 4  ;;  %s1124_s6 = int_to_ptr.vmem [resolvable:$false] %s1123_s6 }
  0x4a   : > { %s1125_s17 = scalar_lea.vmem %s1124_s6, 32  ;;  %p1126_p8 = scmp.lt.s32.totalorder %s1569_s9, %s1124_s6 }
  0x4b   : > { %p1121_p12 = pnand %p1119_p3, %p1105_p11  ;;  %p1127_p4 = scmp.lt.s32.totalorder %s1125_s17, %s1118_s26 }
  0x4d   : > { %p1122_p0 = pneg %p1121_p12  ;;  %p1128_p5 = por %p1127_p4, %p1126_p8 }
  0x4f   : > { %p1129_p2 = pnand %p1128_p5, %p1122_p0 }
  0x51   : > { %1132 = shalt.err (!%p1129_p2)
}
  0x52   : > { %959 = dma.hbm_to_vmem [thread:$0]  (!%p1555_p7), %s1567_s5, 16, %s1569_s9, %s1571_s21  }
  0x53   : > { %p1928_p8 = scmp.lt.s32.totalorder %s1347_s14, 15  ;;  %p895_p9 = scmp.ge.s32.totalorder %s1347_s14, 1 }
  0x54   : > { %p348_p10 = scmp.lt.s32.totalorder %s1347_s14, 16  ;;  %s889_s26 = sshll.u32 %s1339_s12, 7 }
  0x55   : > { %p1604_p0 = pnand %p1928_p8, %p1517_p13  ;;  %s1931_s0 = sld [smem:[#allocation27_spill]] }
  0x56   : > { %p1610_p1 = pnand %p895_p9, %p348_p10  ;;  %s311_s5 = sand.u32 1, %s1315_s29  }
  0x57   : > { %s267_s9 = scalar_lea.sflag [#allocation4], %s1548_s19 }
  0x58   : > { %s1930_s16 = scalar_select %p1610_p1, 1, 0 }
  0x5b   : > { %s1618_s17 = scalar_lea.hbm %s1931_s0, %s889_s26  ;;  %s1138_s14 = scalar_lea.hbm %s1931_s0, 2560 }
  0x5c   : > { %s1133_s22 = scalar_lea.hbm %s1618_s17, 512  ;;  %p1139_p12 = scmp.lt.u32.totalorder %s1618_s17, %s1931_s0 }
  0x5d   : > { %p1134_p13 = scmp.ne.s32.totalorder %s1618_s17, %s1133_s22  ;;  %p1140_p4 = scmp.lt.u32.totalorder %s1138_s14, %s1133_s22 }
  0x5e   : > { %p1142_p2 = scmp.lt.u32.totalorder %s1133_s22, %s1618_s17 }
  0x5f   : > { %p1136_p6 = pnand %p1134_p13, %p1105_p11  ;;  %p1141_p5 = por %p1140_p4, %p1139_p12 }
  0x61   : > { %p1137_p3 = pneg %p1136_p6  ;;  %p1143_p8 = por %p1142_p2, %p1141_p5 }
  0x63   : > { %p1144_p9 = pnand %p1143_p8, %p1137_p3 }
  0x65   : > { %1147 = shalt.err (!%p1144_p9)
}
  0x66   : > { %s1148_s26 = scalar_lea.vmem %s1560_s27, 512  ;;  %s1350_s1 = smov [#allocation3]  }
  0x67   : > { %p1149_p10 = scmp.ne.s32.totalorder %s1560_s27, %s1148_s26  ;;  %s1153_s7 = sshll.u32 %s1350_s1, 4  ;;  %s1154_s7 = int_to_ptr.vmem [resolvable:$false] %s1153_s7 }
  0x68   : > { %s1155_s4 = scalar_lea.vmem %s1154_s7, 1024  ;;  %p1156_p1 = scmp.lt.s32.totalorder %s1560_s27, %s1154_s7 }
  0x69   : > { %p1151_p13 = pnand %p1149_p10, %p1105_p11  ;;  %p1157_p12 = scmp.lt.s32.totalorder %s1155_s4, %s1148_s26 }
  0x6b   : > { %p1152_p6 = pneg %p1151_p13  ;;  %p1158_p4 = por %p1157_p12, %p1156_p1 }
  0x6d   : > { %p1159_p5 = pnand %p1158_p4, %p1152_p6 }
  0x6f   : > { %1162 = shalt.err (!%p1159_p5)
}
  0x70   : > { %s1351_s14 = smov 640   ;;  %s1352_s6 = smov 128  }
  0x71   : > { %s1353_s22 = smov 8   ;;  %s891_s18 = sshll.u32 %s311_s5, 6 }
  0x72   : > { %956 = dma.hbm_to_vmem [thread:$0]  (!%p1555_p7), %s1618_s17, 512, %s1560_s27, %s267_s9, %s1351_s14, %s1352_s6, %s1353_s22  }
  0x73   : > { %s1932_s26 = smul.u32 48, %s1339_s12  ;;  %s313_s11 = scalar_lea.vmem [#allocation8], %s891_s18 }
  0x74   : > { %s322_s10 = sshll.u32 %s313_s11, 4  ;;  %p1165_p11 = pneg %p1604_p0  ;;  %s1657_s10 = int_to_ptr.vmem [resolvable:$true] %s322_s10 }
  0x75   : > { %s319_s1 = sadd.s32 %s1343_s13, %s1932_s26  ;;  %s1168_s30 = scalar_lea.hbm %s1876_s3, 15360 }
  0x76   : > { %s894_s7 = sshll.u32 %s319_s1, 6 }
  0x77   : > { %s1655_s2 = scalar_lea.hbm %s1876_s3, %s894_s7 }
  0x78   : > { %s1163_s19 = scalar_lea.hbm %s1655_s2, 1024  ;;  %p1169_p2 = scmp.lt.u32.totalorder %s1655_s2, %s1876_s3 }
  0x79   : > { %p1164_p7 = scmp.ne.s32.totalorder %s1655_s2, %s1163_s19  ;;  %p1170_p8 = scmp.lt.u32.totalorder %s1168_s30, %s1163_s19 }
  0x7a   : > { %p1172_p10 = scmp.lt.u32.totalorder %s1163_s19, %s1655_s2 }
  0x7b   : > { %p1166_p1 = pnand %p1165_p11, %p1164_p7  ;;  %p1171_p9 = por %p1170_p8, %p1169_p2 }
  0x7d   : > { %p1167_p3 = pneg %p1166_p1  ;;  %p1173_p13 = por %p1172_p10, %p1171_p9 }
  0x7f   : > { %p1174_p6 = pnand %p1173_p13, %p1167_p3 }
  0x81   : > { %1177 = shalt.err (!%p1174_p6)
}
  0x82   : > { %s1178_s11 = scalar_lea.vmem %s1657_s10, 1024  ;;  %s1354_s9 = smov [#allocation8]  }
  0x83   : > { %p1179_p12 = scmp.ne.s32.totalorder %s1657_s10, %s1178_s11  ;;  %s1183_s14 = sshll.u32 %s1354_s9, 4  ;;  %s1184_s14 = int_to_ptr.vmem [resolvable:$false] %s1183_s14 }
  0x84   : > { %s1185_s6 = scalar_lea.vmem %s1184_s14, 2048  ;;  %p1186_p7 = scmp.lt.s32.totalorder %s1657_s10, %s1184_s14 }
  0x85   : > { %p1181_p4 = pnand %p1179_p12, %p1165_p11  ;;  %p1187_p1 = scmp.lt.s32.totalorder %s1185_s6, %s1178_s11 }
  0x87   : > { %p1182_p5 = pneg %p1181_p4  ;;  %p1188_p2 = por %p1187_p1, %p1186_p7 }
  0x89   : > { %p1189_p8 = pnand %p1188_p2, %p1182_p5 }
  0x8b   : > { %1192 = shalt.err (!%p1189_p8)
}
  0x8c   : > { %s1355_s22 = smov 192   ;;  %s1356_s18 = smov 64  }
  0x8d   : > { %s1357_s26 = smov 4   ;;  %p1933_p11 = scmp.ne.s32.totalorder %s1930_s16, 0 }
  0x8e   : > { %962 = dma.hbm_to_vmem [thread:$0]  (!%p1604_p0), %s1655_s2, 1024, %s1657_s10, %s1571_s21, %s1355_s22, %s1356_s18, %s1357_s26  }
  0x8f   : > { %352 = sbr.rel (%p1933_p11) target bundleno = 535 (0x217), region = 48  ;;  %s1688_s1 = sand.u32 (!%p1933_p11), 1, %s1323_s8  }
  0x90   : > { %s896_s7 = sshll.u32 (!%p1933_p11), %s1688_s1, 5  ;;  %s355_s4 = scalar_lea.sflag (!%p1933_p11), [#allocation4], %s1688_s1 }
  0x91   : > { %s1692_s19 = scalar_lea.vmem (!%p1933_p11), [#allocation3], %s896_s7  ;;  %p1934_p3 = scmp.ne.s32.totalorder (!%p1933_p11), %s1916_s23, 0 }
  0x96   : > { %1278 = dma.done.wait (%p1934_p3), %s355_s4, 512  }
  0x97   : > { %1280 = vsyncadd (%p1934_p3), %s355_s4, 4294966784  ;;  %s363_s2 = sand.u32 1, %s1472_s15  }
  0x98   : > { %s364_s10 = scalar_lea.sflag [#allocation7], %s363_s2 }
  0x99   : > { %1282 = dma.done.wait (%p1934_p3), %s364_s10, 16  }
  0x9a   : > { %1284 = vsyncadd (%p1934_p3), %s364_s10, 4294967280  ;;  %s373_s24 = sand.u32 1, %s1311_s28   ;;  %p1935_p0 = scmp.ne.s32.totalorder %s1919_s20, 0 }
  0x9b   : > { %s897_s16 = sshll.u32 %s373_s24, 6 }
  0x9c   : > { %s1705_s27 = scalar_lea.vmem [#allocation8], %s897_s16 }
  0x9d   : > { %1286 = dma.done.wait (%p1935_p0), %s364_s10, 1024  }
  0x9e   : > { %1288 = vsyncadd (%p1935_p0), %s364_s10, 4294966272  ;;  %s1936_s15 = sld [smem:[#allocation17_spill]]  ;;  %s1937_s0 = sld [smem:[#allocation18_spill]] }
  0x9f   : > { %s1898_s30 = sand.u32 1, %s1299_s25   ;;  %s1938_s20 = sld [smem:[#allocation29_spill]] }
  0xa0   : > { %s898_s23 = sshll.u32 %s1898_s30, 5  ;;  %s1939_s22 = sld [smem:[#allocation30_spill]] }
  0xa1   : > { %s1940_s4 = sld [smem:[#allocation31_spill]]  ;;  %s1941_s16 = sld [smem:[#allocation32_spill]] }
  0xa2   : > { %s1738_s21 = scalar_lea.vmem [#allocation9], %s898_s23 }
  0xa4   : > { %p427_p9 = scmp.lt.s32.totalorder %s1936_s15, 4  ;;  %p431_p10 = scmp.lt.s32.totalorder %s1937_s0, 2 }
  0xa5   : > { %p899_p13 = scmp.ne.s32.totalorder %s1936_s15, 0 }
  0xa6   : > { %s1717_s17 = scalar_select %p427_p9, %s1936_s15, 4 }
  0xa7   : > { %s1983_s0 = smov (!%p431_p10, %s1937_s0), 2  ;;  %444 = sbr.rel (%p899_p13) target bundleno = 174 (0xae), region = 64 }
  0xa8   : > { %s429_s9 = scalar_lea.vmem %s1938_s20, %s1717_s17  ;;  %s433_s18 = scalar_lea.vmem %s1939_s22, %s1983_s0  ;;  %v1358_v0 = vmov (!%p899_p13), 0.0  }
  0xa9   : > { %s436_s2 = scalar_lea.vmem %s1940_s4, %s1983_s0  ;;  %s439_s30 = scalar_lea.vmem %s1941_s16, %s1983_s0  ;;  %445 = vst [vmem:[#allocation2] sm:$0xff] (!%p899_p13), %v1358_v0  ;;  %446 = vst [vmem:[#allocation2 + $0x8] sm:$0xff] (!%p899_p13), %v1358_v0 }
  0xaa   : > { %447 = vst [vmem:[#allocation2 + $0x10] sm:$0xff] (!%p899_p13), %v1358_v0  ;;  %448 = vst [vmem:[#allocation2 + $0x18] sm:$0xff] (!%p899_p13), %v1358_v0 }
  0xae PF: > { %v1091_v1 = vld [vmem:[%s1705_s27] sm:$0xff]   ;;  %v1092_v2 = vld [vmem:[%s1705_s27 + $0x8] sm:$0xff]   ;;  %v1093_v3 = vld [vmem:[%s1705_s27 + $0x10] sm:$0xff]   ;;  %v486_v40 = vlaneseq }
  0xaf   : > { %924 = vmatprep.subr.bf16.mxu0 %v1091_v1  ;;  %v1094_v4 = vld [vmem:[%s1705_s27 + $0x18] sm:$0xff]   ;;  %v450_v6 = vld [vmem:[%s1692_s19 + $0x8] sm:$0xff]  ;;  %v451_v7 = vld [vmem:[%s1692_s19 + $0x10] sm:$0xff] }
  0xb0   : > { %925 = vmatpush3.bf16.msra.mxu0 %v1091_v1  ;;  %v449_v5 = vld [vmem:[%s1692_s19] sm:$0xff]  ;;  %v452_v8 = vld [vmem:[%s1692_s19 + $0x18] sm:$0xff]  ;;  %v463_v11 = vmul.f32 %v450_v6, %v450_v6  ;;  %v464_v12 = vmul.f32 %v451_v7, %v451_v7  ;;  %v1096_v21 = vld [vmem:[%s1705_s27 + $0x28] sm:$0xff]   ;;  %v487_v41 = vshrl.u32 %v486_v40, 7  ;;  %s1942_s19 = scalar_lea.vmem [#allocation6], %s1688_s1  ;;  %s1944_s1 = sld [smem:[#allocation17_spill]] }
  0xb1   : > { %926 = vmatprep.subr.bf16.mxu0 %v1092_v2  ;;  %v453_v9 = vadd.f32 %v450_v6, %v449_v5  ;;  %v462_v10 = vmul.f32 %v449_v5, %v449_v5  ;;  %v465_v14 = vmul.f32 %v452_v8, %v452_v8  ;;  %v1095_v16 = vld [vmem:[%s1705_s27 + $0x20] sm:$0xff]   ;;  %v1097_v26 = vld [vmem:[%s1705_s27 + $0x30] sm:$0xff]   ;;  %v1098_v31 = vld [vmem:[%s1705_s27 + $0x38] sm:$0xff]  }
  0xb2   : > { %v481_v42 = vld [vmem:[%s1942_s19] sm:$0x1]  ;;  %v1755_v43 = vsub.s32 0, %v487_v41  ;;  %v506_v61 = vld [vmem:[#allocation2 + $0x10] sm:$0xff]  ;;  %v507_v0 = vld [vmem:[#allocation2 + $0x18] sm:$0xff] }
  0xb3   : > { %v454_v13 = vadd.f32 %v453_v9, %v451_v7  ;;  %v466_v15 = vadd.f32 %v463_v11, %v462_v10  ;;  %v483_v46 = vld [vmem:[%s429_s9] sm:$0x1] }
  0xb4   : > { %927 = vmatpush3.bf16.msra.mxu0 %v1092_v2  ;;  %v504_v62 = vld [vmem:[#allocation2] sm:$0xff] }
  0xb5   : > { %928 = vmatprep.subr.bf16.mxu0 %v1093_v3  ;;  %v455_v17 = vadd.f32 %v454_v13, %v452_v8  ;;  %v467_v18 = vadd.f32 %v466_v15, %v464_v12 }
  0xb6   : > { %p908_p6 = scmp.ne.s32.totalorder %s1944_s1, 4 }
  0xb7   : > { %v456_v19 = vrot.slane %v455_v17, 4  ;;  %v468_v20 = vadd.f32 %v467_v18, %v465_v14  ;;  %v909_v13 = vld [vmem:[%s433_s18] ss:$0 sm:$0xff] (!%p908_p6) }
  0xb8   : > { %929 = vmatpush3.bf16.msra.mxu0 %v1093_v3  ;;  %v505_v3 = vld [vmem:[#allocation2 + $0x8] sm:$0xff] }
  0xb9   : > { %930 = vmatprep.subr.bf16.mxu0 %v1094_v4  ;;  %v457_v22 = vadd.f32 %v456_v19, %v455_v17  ;;  %v469_v23 = vrot.slane %v468_v20, 4 }
  0xbb   : > { %v458_v24 = vrot.slane %v457_v22, 2  ;;  %v470_v25 = vadd.f32 %v469_v23, %v468_v20 }
  0xbc   : > { %931 = vmatpush3.bf16.msra.mxu0 %v1094_v4 }
  0xbd   : > { %932 = vmatprep.subr.bf16.mxu0 %v1095_v16  ;;  %v459_v27 = vadd.f32 %v458_v24, %v457_v22  ;;  %v471_v28 = vrot.slane %v470_v25, 2 }
  0xbf   : > { %v460_v29 = vrot.slane %v459_v27, 1  ;;  %v472_v30 = vadd.f32 %v471_v28, %v470_v25 }
  0xc0   : > { %933 = vmatpush3.bf16.msra.mxu0 %v1095_v16 }
  0xc1   : > { %934 = vmatprep.subr.bf16.mxu0 %v1096_v21  ;;  %v461_v32 = vadd.f32 %v460_v29, %v459_v27  ;;  %v473_v33 = vrot.slane %v472_v30, 1 }
  0xc3   : > { %v474_v34 = vadd.f32 %v473_v33, %v472_v30  ;;  %v475_v35 = vmul.f32 0.03125, %v461_v32 }
  0xc4   : > { %935 = vmatpush3.bf16.msra.mxu0 %v1096_v21 }
  0xc5   : > { %936 = vmatprep.subr.bf16.mxu0 %v1097_v26  ;;  %v476_v36 = vmul.f32 0.03125, %v474_v34  ;;  %v477_v37 = vmul.f32 %v475_v35, %v475_v35 }
  0xc7   : > { %v478_v38 = vsub.f32 %v476_v36, %v477_v37 }
  0xc8   : > { %937 = vmatpush3.bf16.msra.mxu0 %v1097_v26 }
  0xc9   : > { %938 = vmatprep.subr.bf16.mxu0 %v1098_v31  ;;  %v479_v39 = vadd.f32 1e-05, %v478_v38 }
  0xcb   : > { %1099 = vrsqrt.f32 %v479_v39 }
  0xcc   : > { %939 = vmatpush3.bf16.msra.mxu0 %v1098_v31 }
  0xd5   : > { %v1100_v44 = vpop.eup %1099 }
  0xd6   : > { %v482_v45 = vmul.f32 %v1100_v44, %v481_v42 }
  0xd8   : > { %v484_v47 = vmul.f32 %v482_v45, %v475_v35  ;;  %v489_v48 = vrot.slane %v482_v45, %v1755_v43 }
  0xda   : > { %v485_v49 = vsub.f32 %v483_v46, %v484_v47  ;;  %v490_v50 = vmul.f32 %v489_v48, %v449_v5  ;;  %v491_v51 = vmul.f32 %v489_v48, %v450_v6  ;;  %v492_v52 = vmul.f32 %v489_v48, %v451_v7 }
  0xdb   : > { %v493_v53 = vmul.f32 %v489_v48, %v452_v8 }
  0xdc   : > { %v498_v54 = vrot.slane %v485_v49, %v1755_v43 }
  0xde   : > { %v500_v55 = vadd.f32 %v498_v54, %v490_v50  ;;  %v501_v56 = vadd.f32 %v498_v54, %v491_v51  ;;  %v502_v57 = vadd.f32 %v498_v54, %v492_v52  ;;  %v503_v58 = vadd.f32 %v498_v54, %v493_v53  ;;  %v682_v50 = vld [vmem:[%s436_s2] sm:$0x1] (!%p908_p6) }
  0xdf   : > { %v684_v53 = vld [vmem:[%s439_s30] sm:$0x1] (!%p908_p6) }
  0xe0   : > { %v508_v59 = vpack.c.bf16 %v501_v56, %v500_v55  ;;  %v509_v60 = vpack.c.bf16 %v503_v58, %v502_v57 }
  0xe2   : > { %940 = vmatprep.mubr.bf16.mxu0 %v508_v59 }
  0xe3   : > { %941 = vmatmul.mubr.bf16.vlgmr.msra.gmra.mrb[0].mxu0 %v509_v60 }
 0x1b6   : > { %v942_v63 = vpop.f32.mrb[0].mxu0  ;;  %634 = sbr.rel (%p908_p6) target bundleno = 505 (0x1f9), region = 68 }
 0x1b7   : > { %v625_v1 = vadd.f32 %v942_v63, %v506_v61  ;;  %v608_v2 = vpop.f32.mrb[1].mxu0 }
 0x1b8   : > { %v623_v4 = vadd.f32 %v608_v2, %v504_v62  ;;  %v943_v5 = vpop.f32.mrb[2].mxu0 }
 0x1b9   : > { %629 = vst [vmem:[#allocation2 + $0x10] sm:$0xff] %v625_v1  ;;  %v626_v6 = vadd.f32 %v943_v5, %v507_v0  ;;  %v611_v7 = vpop.f32.mrb[3].mxu0 }
 0x1ba   : > { %627 = vst [vmem:[#allocation2] sm:$0xff] %v623_v4  ;;  %v624_v8 = vadd.f32 %v611_v7, %v505_v3 }
 0x1bb   : > { %630 = vst [vmem:[#allocation2 + $0x18] sm:$0xff] %v626_v6 }
 0x1bc   : > { %628 = vst [vmem:[#allocation2 + $0x8] sm:$0xff] %v624_v8 }
 0x1c0   : > { %v637_v11 = vld [vmem:[#allocation2 + $0x10] sm:$0xff] }
 0x1c1   : > { %v635_v9 = vld [vmem:[#allocation2] sm:$0xff]  ;;  %v648_v16 = vadd.f32 %v909_v13, %v637_v11 }
 0x1c2   : > { %v638_v12 = vld [vmem:[#allocation2 + $0x18] sm:$0xff]  ;;  %v646_v14 = vadd.f32 %v909_v13, %v635_v9 }
 0x1c3   : > { %v636_v10 = vld [vmem:[#allocation2 + $0x8] sm:$0xff]  ;;  %v649_v17 = vadd.f32 %v909_v13, %v638_v12  ;;  %v652_v20 = vmax.f32 %v648_v16, 0.0 }
 0x1c4   : > { %v647_v15 = vadd.f32 %v909_v13, %v636_v10  ;;  %v650_v18 = vmax.f32 %v646_v14, 0.0 }
 0x1c5   : > { %v653_v21 = vmax.f32 %v649_v17, 0.0  ;;  %v665_v25 = vmul.f32 %v652_v20, %v652_v20 }
 0x1c6   : > { %v651_v19 = vmax.f32 %v647_v15, 0.0  ;;  %v663_v23 = vmul.f32 %v650_v18, %v650_v18 }
 0x1c7   : > { %v666_v27 = vmul.f32 %v653_v21, %v653_v21 }
 0x1c8   : > { %v654_v22 = vadd.f32 %v651_v19, %v650_v18  ;;  %v664_v24 = vmul.f32 %v651_v19, %v651_v19 }
 0x1ca   : > { %v655_v26 = vadd.f32 %v654_v22, %v652_v20  ;;  %v667_v28 = vadd.f32 %v664_v24, %v663_v23 }
 0x1cc   : > { %v656_v29 = vadd.f32 %v655_v26, %v653_v21  ;;  %v668_v30 = vadd.f32 %v667_v28, %v665_v25 }
 0x1ce   : > { %v657_v31 = vrot.slane %v656_v29, 4  ;;  %v669_v32 = vadd.f32 %v668_v30, %v666_v27 }
 0x1d0   : > { %v658_v33 = vadd.f32 %v657_v31, %v656_v29  ;;  %v670_v34 = vrot.slane %v669_v32, 4 }
 0x1d2   : > { %v659_v35 = vrot.slane %v658_v33, 2  ;;  %v671_v36 = vadd.f32 %v670_v34, %v669_v32 }
 0x1d4   : > { %v660_v37 = vadd.f32 %v659_v35, %v658_v33  ;;  %v672_v38 = vrot.slane %v671_v36, 2 }
 0x1d6   : > { %v661_v39 = vrot.slane %v660_v37, 1  ;;  %v673_v40 = vadd.f32 %v672_v38, %v671_v36 }
 0x1d8   : > { %v662_v41 = vadd.f32 %v661_v39, %v660_v37  ;;  %v674_v42 = vrot.slane %v673_v40, 1 }
 0x1da   : > { %v675_v44 = vadd.f32 %v674_v42, %v673_v40  ;;  %v676_v45 = vmul.f32 0.03125, %v662_v41 }
 0x1dc   : > { %v677_v46 = vmul.f32 0.03125, %v675_v44  ;;  %v678_v47 = vmul.f32 %v676_v45, %v676_v45 }
 0x1de   : > { %v679_v48 = vsub.f32 %v677_v46, %v678_v47 }
 0x1e0   : > { %v680_v49 = vadd.f32 1e-05, %v679_v48 }
 0x1e2   : > { %1101 = vrsqrt.f32 %v680_v49 }
 0x1ec   : > { %v1102_v51 = vpop.eup %1101 }
 0x1ed   : > { %v683_v52 = vmul.f32 %v1102_v51, %v682_v50 }
 0x1ef   : > { %v685_v54 = vmul.f32 %v683_v52, %v676_v45  ;;  %v690_v55 = vrot.slane %v683_v52, %v1755_v43 }
 0x1f1   : > { %v686_v56 = vsub.f32 %v684_v53, %v685_v54  ;;  %v691_v57 = vmul.f32 %v690_v55, %v650_v18  ;;  %v692_v58 = vmul.f32 %v690_v55, %v651_v19  ;;  %v693_v59 = vmul.f32 %v690_v55, %v652_v20 }
 0x1f2   : > { %v694_v60 = vmul.f32 %v690_v55, %v653_v21 }
 0x1f3   : > { %v699_v61 = vrot.slane %v686_v56, %v1755_v43 }
 0x1f5   : > { %v701_v62 = vadd.f32 %v699_v61, %v691_v57  ;;  %v702_v63 = vadd.f32 %v699_v61, %v692_v58  ;;  %v703_v0 = vadd.f32 %v699_v61, %v693_v59  ;;  %v704_v1 = vadd.f32 %v699_v61, %v694_v60 }
 0x1f7   : > { %705 = vst [vmem:[%s1738_s21] sm:$0xff] %v701_v62  ;;  %706 = vst [vmem:[%s1738_s21 + $0x8] sm:$0xff] %v702_v63 }
 0x1f8   : > { %707 = vst [vmem:[%s1738_s21 + $0x10] sm:$0xff] %v703_v0  ;;  %708 = vst [vmem:[%s1738_s21 + $0x18] sm:$0xff] %v704_v1 }
 0x1f9 PF: > { %s1948_s0 = sld [smem:[#allocation18_spill]]  ;;  %s1949_s30 = sld [smem:[#allocation25_spill]] }
 0x1fa   : > { %s1950_s2 = sld [smem:[#allocation33_spill]]  ;;  %s722_s24 = sshll.u32 %s1738_s21, 4  ;;  %s1793_s24 = int_to_ptr.vmem [resolvable:$true] %s722_s24 }
 0x1fb   : > { %s1951_s16 = sand.u32 1, %s1299_s25   ;;  %s1193_s27 = scalar_lea.vmem %s1793_s24, 512 }
 0x1fc   : > { %s1797_s19 = scalar_lea.sflag [#allocation5], %s1951_s16  ;;  %p1194_p12 = scmp.ne.s32.totalorder %s1793_s24, %s1193_s27 }
 0x1fd   : > { %s1359_s15 = smov [#allocation9]  }
 0x1fe   : > { %s1197_s23 = sshll.u32 %s1359_s15, 4  ;;  %s1198_s23 = int_to_ptr.vmem [resolvable:$false] %s1197_s23 }
 0x1ff   : > { %s911_s26 = sshll.u32 %s1948_s0, 7  ;;  %p1952_p4 = scmp.ne.s32.totalorder %s1949_s30, 0 }
 0x200   : > { %s1790_s10 = scalar_lea.hbm %s1950_s2, %s911_s26  ;;  %s1199_s1 = scalar_lea.vmem %s1198_s23, 1024 }
 0x201   : > { %p1195_p5 = pnand %p1194_p12, %p1952_p4  ;;  %p1200_p1 = scmp.lt.s32.totalorder %s1793_s24, %s1198_s23 }
 0x202   : > { %p1201_p2 = scmp.lt.s32.totalorder %s1199_s1, %s1193_s27 }
 0x203   : > { %p1196_p7 = pneg %p1195_p5 }
 0x204   : > { %p1202_p8 = por %p1201_p2, %p1200_p1 }
 0x206   : > { %p1203_p11 = pnand %p1202_p8, %p1196_p7 }
 0x208   : > { %1206 = shalt.err (!%p1203_p11)
}
 0x209   : > { %s1207_s21 = scalar_lea.hbm %s1790_s10, 512  ;;  %s1211_s11 = scalar_lea.hbm %s1950_s2, 1536 }
 0x20a   : > { %p1208_p3 = scmp.ne.s32.totalorder %s1790_s10, %s1207_s21  ;;  %p1212_p10 = scmp.lt.u32.totalorder %s1790_s10, %s1950_s2 }
 0x20b   : > { %p1213_p13 = scmp.lt.u32.totalorder %s1211_s11, %s1207_s21  ;;  %p1215_p12 = scmp.lt.u32.totalorder %s1207_s21, %s1790_s10 }
 0x20c   : > { %p1209_p0 = pnand %p1208_p3, %p1952_p4 }
 0x20d   : > { %p1214_p6 = por %p1213_p13, %p1212_p10 }
 0x20e   : > { %p1210_p9 = pneg %p1209_p0 }
 0x20f   : > { %p1216_p5 = por %p1215_p12, %p1214_p6 }
 0x211   : > { %p1217_p7 = pnand %p1216_p5, %p1210_p9 }
 0x213   : > { %1220 = shalt.err (!%p1217_p7)
}
 0x214   : > { %s1360_s14 = smov 128   ;;  %s1361_s6 = smov 384  }
 0x215   : > { %s1362_s22 = smov 8  }
 0x216   : > { %951 = dma.vmem_to_hbm [thread:$0]  (%p1952_p4), %s1793_s24, 512, %s1790_s10, %s1797_s19, %s1360_s14, %s1361_s6, %s1362_s22  }
 0x217 PF: > { %s1953_s18 = sld [smem:[#allocation19_spill]]  ;;  %s1954_s0 = sld [smem:[#allocation14_spill]] }
 0x218   : > { %s1955_s26 = sld [smem:[#allocation26_spill]] }
 0x21d   : > { %p968_p1 = scmp.ge.s32.totalorder %s1953_s18, 2  ;;  %s737_s7 = sand.u32 1, %s1954_s0  }
 0x21e   : > { %p1956_p2 = scmp.ne.s32.totalorder %s1955_s26, 0  ;;  %s738_s4 = scalar_lea.sflag [#allocation5], %s737_s7 }
 0x220   : > { %p964_p8 = pnand %p968_p1, %p1956_p2 }
 0x222   : > { %1290 = dma.done.wait (!%p964_p8), %s738_s4, 512  }
 0x223   : > { %1292 = vsyncadd (!%p964_p8), %s738_s4, 4294966784  ;;  %s26_s14 = sadd.s32 1, %s1953_s18   ;;  %s1958_s30 = sld [smem:[#allocation15_spill]] }
 0x224   : > { %p1826_p11 = scmp.ge.s32.totalorder %s26_s14, 17   ;;  %s1959_s26 = sld [smem:[#allocation24_spill]] }
 0x225   : > { %s1960_s10 = sld [smem:[#allocation23_spill]]  ;;  %s1961_s19 = sld [smem:[#allocation16_spill]] }
 0x226   : > { %s1962_s9 = sld [smem:[#allocation22_spill]]  ;;  %s1963_s15 = sld [smem:[#allocation20_spill]] }
 0x227   : > { %s1964_s23 = sld [smem:[#allocation21_spill]]  ;;  %s1965_s24 = smov %s1299_s25 }
 0x228   : > { %s1967_s27 = smov %s1311_s28  ;;  %s1968_s28 = smov %s1315_s29 }
 0x229   : > { %s1966_s25 = smov %s1958_s30  ;;  %s1970_s30 = smov %s1323_s8 }
 0x22a   : > { %s1973_s11 = smov %s1343_s13  ;;  %25 = sbr.rel (!%p1826_p11) target bundleno = 20 (0x14), region = 137 }
 0x22b   : > { %s1969_s29 = smov %s1960_s10  ;;  %s1971_s8 = smov %s1961_s19 }
 0x22c   : > { %s1972_s10 = smov %s1339_s12  ;;  %s1974_s12 = smov %s1963_s15 }
 0x22d   : > { %s1975_s13 = smov %s1964_s23 }
 0x231   :  { %743 = vsyncpa [#allocation4], 1 }
 0x232   :  { %745 = vsyncpa [#allocation4 + $0x1], 1 }
 0x233   :  { %746 = vsyncpa [#allocation7], 1 }
 0x234   :  { %748 = vsyncpa [#allocation7 + $0x1], 1 }
 0x235   :  { %749 = vsyncpa [#allocation5], 1 }
 0x236   :  { %751 = vsyncpa [#allocation5 + $0x1], 1 }

</bundles_post_ra>
